<compile_context>
chip_gen: v7x
topology: tpu7x:2x2x1
jax: 0.10.0
libtpu: 0.0.40
codegen_flags: <defaults>
</compile_context>

<pallas_src>
import jax
import jax.numpy as jnp
from jax import lax
from jax.experimental import pallas as pl
from jax.experimental.pallas import tpu as pltpu


def _round_up(x, m):
    return ((x + m - 1) // m) * m


def _pick_tile(tb_cap, batch):
    """Largest lane-aligned batch tile <= tb_cap; trimmed for tiny batches and
    capped so grid >= 2 when the batch can feed both v7x TensorCores."""
    tb = min(tb_cap, max(128, _round_up(batch, 128)))
    if batch > 128:
        tb = min(tb, max(128, _round_up((batch + 1) // 2, 128)))
    return max(128, (tb // 128) * 128)


# ---------------------------------------------------------------------------
# Fused path: VMEM-resident tables, in-kernel one-hot MXU gather.
# ---------------------------------------------------------------------------
def _bpr_fused_kernel(ids_ref, ut_ref, it_ref, o_ref):
    # ids_ref: (3, tb) int32  rows: [userid, pos_itemid, neg_itemid]
    # ut_ref : (E, U) f32     user table (transposed), grid-resident
    # it_ref : (E, I) f32     item table (transposed), grid-resident
    # o_ref  : (1, tb) f32    lane-dense output tile
    E, U = ut_ref.shape
    num_items = it_ref.shape[1]
    tb = ids_ref.shape[1]
    f32 = jnp.float32

    uid = ids_ref[0:1, :]                                  # (1, tb)
    pid = ids_ref[1:2, :]
    nid = ids_ref[2:3, :]

    u_iota = lax.broadcasted_iota(jnp.int32, (U, tb), 0)
    i_iota = lax.broadcasted_iota(jnp.int32, (num_items, tb), 0)

    oh_u = (u_iota == uid).astype(f32)                     # (U, tb) one-hot
    oh_pn = ((i_iota == pid).astype(f32)
             - (i_iota == nid).astype(f32))                # (I, tb), +1 pos / -1 neg

    # One-hot gathers on the otherwise-idle MXU.  HIGHEST keeps the gathered
    # f32 table values exact (the one-hot operand is exactly representable, so
    # the multi-pass bf16 decomposition reconstructs full-precision values).
    u_t = jnp.dot(ut_ref[...], oh_u,
                  precision=lax.Precision.HIGHEST,
                  preferred_element_type=f32)              # (E, tb) == u^T
    pn_t = jnp.dot(it_ref[...], oh_pn,
                   precision=lax.Precision.HIGHEST,
                   preferred_element_type=f32)             # (E, tb) == (p - n)^T

    # Fused u*(p-n); reduce over E with a ones-contraction so the result lands
    # directly in the lane-dense (1, tb) layout (unmasked vst).
    d = u_t * pn_t                                          # (E, tb)
    ones = jnp.ones((1, E), f32)
    o_ref[...] = lax.dot_general(
        ones, d, dimension_numbers=(((1,), (0,)), ((), ())),
        precision=lax.Precision.HIGHEST,
        preferred_element_type=f32)                         # (1, tb)


# ---------------------------------------------------------------------------
# Fallback path (tables too large for VMEM / one-hot contraction too wide):
# XLA gather in the wrapper, kernel streams (tb, E) activation tiles.
# ---------------------------------------------------------------------------
def _bpr_stream_kernel(u_ref, p_ref, n_ref, o_ref):
    d = u_ref[...] * (p_ref[...] - n_ref[...])              # fused u*(p-n), (tb, E)
    ones = jnp.ones((1, d.shape[1]), jnp.float32)
    o_ref[...] = lax.dot_general(
        ones, d, dimension_numbers=(((1,), (1,)), ((), ())),
        precision=lax.Precision.HIGHEST,
        preferred_element_type=jnp.float32)                 # (1, tb)


def mf_bpr_forward(batch, user_table, item_table, *,
                   vmem_budget_bytes=24 * 1024 * 1024,
                   vmem_limit_bytes=48 * 1024 * 1024):
    """Forward pass of MatrixFactorizationBPRModel.

    batch:       (B, 3) int32  columns [userid, pos_itemid, neg_itemid]
    user_table:  (U, E) float32
    item_table:  (I, E) float32
    returns:     (B,)   float32  == sum(u*pos, -1) - sum(u*neg, -1)
    """
    B = batch.shape[0]
    U, E = user_table.shape
    I, E2 = item_table.shape
    assert E == E2, "user/item embedding sizes must match"

    r8 = lambda x: _round_up(x, 8)
    r128 = lambda x: _round_up(x, 128)

    # Lane-padded, double-buffered footprint of the resident (transposed) tables.
    tables_bytes = 2 * 4 * r8(E) * (r128(U) + r128(I))
    # Per-batch-element (per-lane) VMEM bytes of the fused kernel's tb-scaled
    # pieces: one-hots (U + pos/neg/diff item rows), two (E, tb) gathered
    # intermediates, double-buffered ids (3->8 sublanes) and output (1->8).
    per_lane_fused = 4 * (r8(U) + 3 * r8(I) + 2 * r8(E) + 2 * 8 + 2 * 8)
    fused_budget = vmem_budget_bytes - tables_bytes
    tb_fused_cap = max(0, (fused_budget // per_lane_fused // 128) * 128)

    use_fused = (tables_bytes <= 12 * 1024 * 1024) and (tb_fused_cap >= 512)

    compiler_params = pltpu.CompilerParams(
        dimension_semantics=("parallel",),
        vmem_limit_bytes=vmem_limit_bytes,
    )

    if use_fused:
        tb = _pick_tile(min(8192, tb_fused_cap), B)
        grid = pl.cdiv(B, tb)
        b_pad = grid * tb

        ids_t = jnp.transpose(batch.astype(jnp.int32))           # (3, B)
        if b_pad != B:
            ids_t = jnp.pad(ids_t, ((0, 0), (0, b_pad - B)))      # padded rows -> id 0
        ut_t = jnp.transpose(user_table.astype(jnp.float32))      # (E, U)
        it_t = jnp.transpose(item_table.astype(jnp.float32))      # (E, I)

        out = pl.pallas_call(
            _bpr_fused_kernel,
            out_shape=jax.ShapeDtypeStruct((1, b_pad), jnp.float32),
            grid_spec=pltpu.PrefetchScalarGridSpec(
                num_scalar_prefetch=0,
                grid=(grid,),
                in_specs=[
                    pl.BlockSpec((3, tb), lambda i: (0, i)),      # ids, streamed
                    pl.BlockSpec((E, U), lambda i: (0, 0)),       # user table, resident
                    pl.BlockSpec((E, I), lambda i: (0, 0)),       # item table, resident
                ],
                out_specs=pl.BlockSpec((1, tb), lambda i: (0, i)),
            ),
            compiler_params=compiler_params,
        )(ids_t, ut_t, it_t)
        return out[0, :B]

    # ----------------- fallback: wrapper gather + streamed tiles -----------------
    # TODO(synk): lane-pack the (tb, E) rows to a 128-multiple last dim
    # (e.g. E=40 -> (tb/16, 640)) for full lane utilization on this path.
    per_row = 3 * 2 * r128(E) * 4 + 2 * 8 * 4          # lane-padded, double-buffered
    tb = _pick_tile(
        min(4096, max(128, (vmem_budget_bytes // per_row // 128) * 128)), B)
    grid = pl.cdiv(B, tb)
    b_pad = grid * tb

    ids = batch.astype(jnp.int32)
    if b_pad != B:
        ids = jnp.pad(ids, ((0, b_pad - B), (0, 0)))

    u_vec = jnp.take(user_table, ids[:, 0], axis=0)     # (b_pad, E)
    p_vec = jnp.take(item_table, ids[:, 1], axis=0)
    n_vec = jnp.take(item_table, ids[:, 2], axis=0)

    emb_spec = pl.BlockSpec((tb, E), lambda i: (i, 0))
    out = pl.pallas_call(
        _bpr_stream_kernel,
        out_shape=jax.ShapeDtypeStruct((1, b_pad), jnp.float32),
        grid_spec=pltpu.PrefetchScalarGridSpec(
            num_scalar_prefetch=0,
            grid=(grid,),
            in_specs=[emb_spec, emb_spec, emb_spec],
            out_specs=pl.BlockSpec((1, tb), lambda i: (0, i)),
        ),
        compiler_params=compiler_params,
    )(u_vec, p_vec, n_vec)
    return out[0, :B]


def _reference_forward(batch, user_table, item_table):
    u = jnp.take(user_table, batch[:, 0], axis=0)
    p = jnp.take(item_table, batch[:, 1], axis=0)
    n = jnp.take(item_table, batch[:, 2], axis=0)
    return jnp.sum(u * p, axis=1) - jnp.sum(u * n, axis=1)


if __name__ == "__main__":
    # Deterministic init, matching nn.Embedding(...).uniform_(-0.005, 0.005).
    user_count, item_count, embed_size = 50, 100, 40

    key = jax.random.PRNGKey(0)
    k_u, k_i, k_b = jax.random.split(key, 3)

    user_table = jax.random.uniform(
        k_u, (user_count, embed_size), jnp.float32, minval=-0.005, maxval=0.005)
    item_table = jax.random.uniform(
        k_i, (item_count, embed_size), jnp.float32, minval=-0.005, maxval=0.005)

    fwd = jax.jit(mf_bpr_forward)

    for batch_size in (8, 300):     # 300 exercises padding + a multi-step grid
        ku, kp, kn = jax.random.split(jax.random.fold_in(k_b, batch_size), 3)
        userids = jax.random.randint(ku, (batch_size, 1), 0, user_count, jnp.int32)
        pos_ids = jax.random.randint(kp, (batch_size, 1), 0, item_count, jnp.int32)
        neg_ids = jax.random.randint(kn, (batch_size, 1), 0, item_count, jnp.int32)
        batch = jnp.concatenate([userids, pos_ids, neg_ids], axis=1)    # (B, 3)

        out = jax.block_until_ready(fwd(batch, user_table, item_table))
        ref = _reference_forward(batch, user_table, item_table)
        assert out.shape == (batch_size,)
        assert jnp.allclose(out, ref, atol=1e-6, rtol=1e-5), (out, ref)

    print("KERNEL_OK")
</pallas_src>

<mosaic_0001>
module attributes {stable_mosaic.version = 11 : i64} {
  func.func @_bpr_fused_kernel(%arg0: i32, %arg1: memref<3x128xi32, #tpu.memory_space<vmem>>, %arg2: memref<40x50xf32, #tpu.memory_space<vmem>>, %arg3: memref<40x100xf32, #tpu.memory_space<vmem>>, %arg4: memref<1x128xf32, #tpu.memory_space<vmem>>) attributes {dimension_semantics = [#tpu.dimension_semantics<parallel>], iteration_bounds = array<i64: 1>, scalar_prefetch = 0 : i64, scratch_operands = 0 : i64, tpu.core_type = #tpu.core_type<tc>, window_params = [{transform_indices = @transform_0, window_bounds = array<i64: 3, 128>}, {pipeline_mode = #tpu.pipeline_mode<synchronous>, transform_indices = @transform_1, window_bounds = array<i64: 40, 50>}, {pipeline_mode = #tpu.pipeline_mode<synchronous>, transform_indices = @transform_2, window_bounds = array<i64: 40, 100>}, {transform_indices = @transform_3, window_bounds = array<i64: 1, 128>}]} {
    %c0 = arith.constant 0 : index
    %c0_0 = arith.constant 0 : index
    %0 = vector.load %arg1[%c0, %c0_0] : memref<3x128xi32, #tpu.memory_space<vmem>>, vector<1x128xi32>
    %c1 = arith.constant 1 : index
    %c0_1 = arith.constant 0 : index
    %1 = vector.load %arg1[%c1, %c0_1] : memref<3x128xi32, #tpu.memory_space<vmem>>, vector<1x128xi32>
    %c2 = arith.constant 2 : index
    %c0_2 = arith.constant 0 : index
    %2 = vector.load %arg1[%c2, %c0_2] : memref<3x128xi32, #tpu.memory_space<vmem>>, vector<1x128xi32>
    %3 = tpu.iota {dimensions = array<i32: 0>} : vector<50x128xi32>
    %4 = tpu.iota {dimensions = array<i32: 0>} : vector<100x128xi32>
    %5 = vector.broadcast %0 : vector<1x128xi32> to vector<50x128xi32>
    %6 = arith.cmpi eq, %3, %5 : vector<50x128xi32>
    %7 = arith.extui %6 : vector<50x128xi1> to vector<50x128xi32>
    %8 = arith.sitofp %7 : vector<50x128xi32> to vector<50x128xf32>
    %9 = vector.broadcast %1 : vector<1x128xi32> to vector<100x128xi32>
    %10 = arith.cmpi eq, %4, %9 : vector<100x128xi32>
    %11 = arith.extui %10 : vector<100x128xi1> to vector<100x128xi32>
    %12 = arith.sitofp %11 : vector<100x128xi32> to vector<100x128xf32>
    %13 = vector.broadcast %2 : vector<1x128xi32> to vector<100x128xi32>
    %14 = arith.cmpi eq, %4, %13 : vector<100x128xi32>
    %15 = arith.extui %14 : vector<100x128xi1> to vector<100x128xi32>
    %16 = arith.sitofp %15 : vector<100x128xi32> to vector<100x128xf32>
    %17 = arith.subf %12, %16 : vector<100x128xf32>
    %c0_3 = arith.constant 0 : index
    %c0_4 = arith.constant 0 : index
    %18 = vector.load %arg2[%c0_3, %c0_4] : memref<40x50xf32, #tpu.memory_space<vmem>>, vector<40x50xf32>
    %cst = arith.constant dense<0.000000e+00> : vector<40x128xf32>
    %19 = tpu.matmul %18, %8, %cst {dimension_numbers = #tpu.dot_dimension_numbers<[1], [0], [0], [1], [0, 0, 1, 1], [], []>, precision = #tpu.contract_precision<fp32>} : vector<40x50xf32>, vector<50x128xf32>, vector<40x128xf32> -> vector<40x128xf32>
    %c0_5 = arith.constant 0 : index
    %c0_6 = arith.constant 0 : index
    %20 = vector.load %arg3[%c0_5, %c0_6] : memref<40x100xf32, #tpu.memory_space<vmem>>, vector<40x100xf32>
    %cst_7 = arith.constant dense<0.000000e+00> : vector<40x128xf32>
    %21 = tpu.matmul %20, %17, %cst_7 {dimension_numbers = #tpu.dot_dimension_numbers<[1], [0], [0], [1], [0, 0, 1, 1], [], []>, precision = #tpu.contract_precision<fp32>} : vector<40x100xf32>, vector<100x128xf32>, vector<40x128xf32> -> vector<40x128xf32>
    %22 = arith.mulf %19, %21 : vector<40x128xf32>
    %cst_8 = arith.constant 1.000000e+00 : f32
    %23 = vector.broadcast %cst_8 : f32 to vector<1x40xf32>
    %cst_9 = arith.constant dense<0.000000e+00> : vector<1x128xf32>
    %24 = tpu.matmul %23, %22, %cst_9 {dimension_numbers = #tpu.dot_dimension_numbers<[1], [0], [0], [1], [0, 0, 1, 1], [], []>, precision = #tpu.contract_precision<fp32>} : vector<1x40xf32>, vector<40x128xf32>, vector<1x128xf32> -> vector<1x128xf32>
    %c0_10 = arith.constant 0 : index
    %c0_11 = arith.constant 0 : index
    %25 = vector.load %arg4[%c0_10, %c0_11] : memref<1x128xf32, #tpu.memory_space<vmem>>, vector<1x128xf32>
    tpu.vector_store %arg4[%c0_10, %c0_11], %24 {strides = array<i32>} : memref<1x128xf32, #tpu.memory_space<vmem>>, vector<1x128xf32>,
    return
  }
  func.func @transform_0(%arg0: i32) -> (i32, i32) {
    %c0_i32 = arith.constant 0 : i32
    %c0_i32_0 = arith.constant 0 : i32
    return %c0_i32, %arg0 : i32, i32
  }
  func.func @transform_1(%arg0: i32) -> (i32, i32) {
    %c0_i32 = arith.constant 0 : i32
    %c0_i32_0 = arith.constant 0 : i32
    %c0_i32_1 = arith.constant 0 : i32
    return %c0_i32, %c0_i32_0 : i32, i32
  }
  func.func @transform_2(%arg0: i32) -> (i32, i32) {
    %c0_i32 = arith.constant 0 : i32
    %c0_i32_0 = arith.constant 0 : i32
    %c0_i32_1 = arith.constant 0 : i32
    return %c0_i32, %c0_i32_0 : i32, i32
  }
  func.func @transform_3(%arg0: i32) -> (i32, i32) {
    %c0_i32 = arith.constant 0 : i32
    %c0_i32_0 = arith.constant 0 : i32
    return %c0_i32, %arg0 : i32, i32
  }
}

</mosaic_0001>

<bundles_post_ra>
// kernel: mf_bpr_forward.1
= control target key start
LH: loop header
LB: loop body
LE: loop exit
PB: predicated region body
PF: predicated region fallthrough
CT: control target
= control target key end

     0   :  { %8 = vsyncpa [#allocation3], 0  ;;  %s4244_s0 = inlined_call_operand.vmem [shape: s32[3,128], index: 0, kind: input, shape index: {}]   ;;  %s4245_s1 = inlined_call_operand.hbm [shape: f32[40,50], index: 1, kind: input, shape index: {}]   ;;  %s4246_s2 = inlined_call_operand.hbm [shape: f32[40,100], index: 2, kind: input, shape index: {}]   ;;  %s4247_s3 = inlined_call_operand.vmem [shape: f32[1,128], index: 3, kind: output, shape index: {}]  }
   0x1   :  { %9 = vsyncpa [#allocation5], 0  ;;  %s3356_s12 = smov [#allocation2]   ;;  %s3308_s16 = scalar_lea.hbm %s4245_s1, 640 }
   0x2   :  { %s17_s13 = sshll.u32 %s3356_s12, 4  ;;  %p3309_p0 = scmp.ne.s32.totalorder %s4245_s1, %s3308_s16  ;;  %s18_s13 = int_to_ptr.vmem [resolvable:$true] %s17_s13 }
   0x3   :  { %p3312_p1 = scmp.lt.u32.totalorder %s3308_s16, %s4245_s1 }
   0x5   :  { %p3314_p2 = pnand %p3312_p1, %p3309_p0 }
   0x7   :  { %3317 = shalt.err (!%p3314_p2)
}
   0x8   :  { %s3318_s21 = scalar_lea.vmem %s18_s13, 640  ;;  %p3323_p4 = scmp.lt.s32.totalorder %s18_s13, %s18_s13 }
   0x9   :  { %p3319_p3 = scmp.ne.s32.totalorder %s18_s13, %s3318_s21  ;;  %p3324_p5 = scmp.lt.s32.totalorder %s3318_s21, %s3318_s21 }
   0xb   :  { %p3325_p6 = por %p3324_p5, %p3323_p4 }
   0xd   :  { %p3326_p7 = pnand %p3325_p6, %p3319_p3 }
   0xf   :  { %3329 = shalt.err (!%p3326_p7)
}
  0x10   :  { %s3357_s22 = smov 128   ;;  %s3358_s23 = smov 8  }
  0x11   :  { %23 = dma.hbm_to_vmem [thread:$0]  %s4245_s1, 640, %s18_s13, [#allocation3], %s3357_s22, %s3357_s22, %s3358_s23  }
  0x12   :  { %s3359_s26 = smov [#allocation4]   ;;  %s3330_s30 = scalar_lea.hbm %s4246_s2, 640 }
  0x13   :  { %s29_s27 = sshll.u32 %s3359_s26, 4  ;;  %p3331_p8 = scmp.ne.s32.totalorder %s4246_s2, %s3330_s30  ;;  %s30_s27 = int_to_ptr.vmem [resolvable:$true] %s29_s27 }
  0x14   :  { %p3334_p9 = scmp.lt.u32.totalorder %s3330_s30, %s4246_s2 }
  0x16   :  { %p3336_p10 = pnand %p3334_p9, %p3331_p8 }
  0x18   :  { %3339 = shalt.err (!%p3336_p10)
}
  0x19   :  { %s3340_s8 = scalar_lea.vmem %s30_s27, 640  ;;  %p3345_p12 = scmp.lt.s32.totalorder %s30_s27, %s30_s27 }
  0x1a   :  { %p3341_p11 = scmp.ne.s32.totalorder %s30_s27, %s3340_s8  ;;  %p3346_p13 = scmp.lt.s32.totalorder %s3340_s8, %s3340_s8 }
  0x1c   :  { %p3347_p0 = por %p3346_p13, %p3345_p12 }
  0x1e   :  { %p3348_p1 = pnand %p3347_p0, %p3341_p11 }
  0x20   :  { %3351 = shalt.err (!%p3348_p1)
}
  0x21   :  { %35 = dma.hbm_to_vmem [thread:$0]  %s4246_s2, 640, %s30_s27, [#allocation5], %s3357_s22, %s3357_s22, %s3358_s23  }
  0x22   :  { %3352 = dma.done.wait [#allocation3], 640  }
  0x23   :  { %3353 = vsyncadd [#allocation3], 4294966656 }
  0x24   :  { %3354 = dma.done.wait [#allocation5], 640  }
  0x25   :  { %3355 = vsyncadd [#allocation5], 4294966656  ;;  %v45_v0 = vlaneseq  ;;  %v4267_v1 = vmov 0.0|0.0   ;;  %vm3361_vm0 = vmmov 0   ;;  %v4284_v3 = vmov 0.0   ;;  %v183_v54 = vld [vmem:[#allocation2] sm:$0xff] }
  0x26   :  { %2991 = vmatprep.subr.bf16.mxu0 %v4267_v1  ;;  %3045 = vmatprep.subr.bf16.mxu1 %v4267_v1  ;;  %v3429_v10 = vld [vmem:[%s4244_s0] ss:$0 sm:$0xff]  ;;  %v3448_v15 = vld [vmem:[%s4244_s0 + $0x1] ss:$0 sm:$0xff]  ;;  %v3453_v16 = vld [vmem:[%s4244_s0 + $0x2] ss:$0 sm:$0xff] }
  0x27   :  { %v46_v2 = vshrl.u32 %v45_v0, 7  ;;  %2507 = vmatprep.mubr.msk.f32.mxu0 %vm3361_vm0, %v4284_v3  ;;  %2693 = vmatprep.mubr.msk.f32.mxu1 %vm3361_vm0, %v4284_v3  ;;  %v4251_v22 = vmov 1.0|1.0   ;;  %vm204_vm11 = vcmask 1041408   ;;  %vm188_vm12 = vcmask 408576   ;;  %v184_v63 = vld [vmem:[#allocation2 + $0x8] sm:$0xff] }
  0x29   :  { %v47_v4 = vadd.s32 8, %v46_v2  ;;  %v3416_v5 = vadd.s32 16, %v46_v2  ;;  %v3418_v6 = vadd.s32 24, %v46_v2  ;;  %v3420_v7 = vadd.s32 32, %v46_v2 }
  0x2a   :  { %v3422_v8 = vadd.s32 40, %v46_v2  ;;  %v3424_v9 = vadd.s32 48, %v46_v2  ;;  %v3431_v11 = vadd.s32 56, %v46_v2  ;;  %v3433_v12 = vadd.s32 64, %v46_v2 }
  0x2b   :  { %v3435_v13 = vadd.s32 72, %v46_v2  ;;  %v3437_v14 = vadd.s32 80, %v46_v2  ;;  %vm63_vm1 = vcmp.eq.s32.totalorder %v46_v2, %v3429_v10  ;;  %vm64_vm2 = vcmp.eq.s32.totalorder %v47_v4, %v3429_v10 }
  0x2c   :  { %vm65_vm3 = vcmp.eq.s32.totalorder %v3416_v5, %v3429_v10  ;;  %vm66_vm4 = vcmp.eq.s32.totalorder %v3418_v6, %v3429_v10  ;;  %v2218_v17 = vsel %vm63_vm1, 1.0, %v4284_v3  ;;  %v2219_v18 = vsel %vm64_vm2, 1.0, %v4284_v3  ;;  %vm3457_vm5 = vmpackc.low %vm64_vm2, %vm63_vm1 }
  0x2d   :  { %v2220_v20 = vsel %vm65_vm3, 1.0, %v4284_v3  ;;  %v2221_v21 = vsel %vm66_vm4, 1.0, %v4284_v3  ;;  %2993 = vmatpush3.bf16.msk.msra.mxu0 %vm3457_vm5, %v4251_v22  ;;  %v3472_v23 = vsub.f32 %v2218_v17, %v2218_v17  ;;  %v3474_v24 = vsub.f32 %v2219_v18, %v2219_v18  ;;  %vm3487_vm6 = vmpackc.low %vm66_vm4, %vm65_vm3 }
  0x2e   :  { %v3476_v25 = vadd.s32 88, %v46_v2  ;;  %v3478_v26 = vadd.s32 96, %v46_v2  ;;  %2994 = vmatprep.subr.bf16.mxu0 %v4267_v1  ;;  %vm88_vm7 = vcmp.eq.s32.totalorder %v46_v2, %v3448_v15  ;;  %vm89_vm8 = vcmp.eq.s32.totalorder %v47_v4, %v3448_v15 }
  0x2f   :  { %vm131_vm9 = vcmp.eq.s32.totalorder %v46_v2, %v3453_v16  ;;  %vm132_vm10 = vcmp.eq.s32.totalorder %v47_v4, %v3453_v16  ;;  %v4266_v28 = vand.u32 4294901760, %v3472_v23  ;;  %v4265_v29 = vand.u32 4294901760, %v3474_v24 }
  0x30   :  { %v3497_v30 = vsub.f32 %v2220_v20, %v2220_v20  ;;  %v3499_v31 = vsub.f32 %v2221_v21, %v2221_v21  ;;  %v2226_v32 = vsel %vm88_vm7, 1.0, %v4284_v3  ;;  %v2227_v33 = vsel %vm89_vm8, 1.0, %v4284_v3 }
  0x31   :  { %v2240_v34 = vsel %vm131_vm9, 1.0, %v4284_v3  ;;  %v2241_v35 = vsel %vm132_vm10, 1.0, %v4284_v3  ;;  %v3508_v36 = vsub.f32 %v3472_v23, %v4266_v28  ;;  %v3513_v37 = vsub.f32 %v3474_v24, %v4265_v29  ;;  %2996 = vmatpush3.bf16.msk.msra.mxu0 %vm3487_vm6, %v4251_v22 }
  0x32   :  { %v170_v38 = vsub.f32 %v2226_v32, %v2240_v34  ;;  %v171_v39 = vsub.f32 %v2227_v33, %v2241_v35  ;;  %2997 = vmatprep.subr.bf16.mxu0 %v4267_v1  ;;  %vm67_vm13 = vcmp.eq.s32.totalorder %v3420_v7, %v3429_v10  ;;  %vm68_vm14 = vcmp.eq.s32.totalorder %v3422_v8, %v3429_v10 }
  0x33   :  { %vm90_vm15 = vcmp.eq.s32.totalorder %v3416_v5, %v3448_v15  ;;  %vm91_vm1 = vcmp.eq.s32.totalorder %v3418_v6, %v3448_v15  ;;  %v4262_v40 = vand.u32 4294901760, %v3497_v30  ;;  %v4259_v41 = vand.u32 4294901760, %v3499_v31  ;;  %vm3529_vm2 = vmpackc.low %vm68_vm14, %vm67_vm13 }
  0x34   :  { %v930_v42 = vand.u32 4294901760, %v170_v38  ;;  %v933_v43 = vand.u32 4294901760, %v171_v39  ;;  %v335_v45 = vand.u32 4294901760, %v3508_v36  ;;  %v342_v46 = vand.u32 4294901760, %v3513_v37 }
  0x35   :  { %v2222_v47 = vsel %vm67_vm13, 1.0, %v4284_v3  ;;  %v2223_v48 = vsel %vm68_vm14, 1.0, %v4284_v3  ;;  %2999 = vmatpush3.bf16.msk.msra.mxu0 %vm3529_vm2, %v4251_v22  ;;  %v2228_v51 = vsel %vm90_vm15, 1.0, %v4284_v3  ;;  %v2229_v52 = vsel %vm91_vm1, 1.0, %v4284_v3 }
  0x36   :  { %v3537_v49 = vpack.c.bf16 %v933_v43, %v930_v42  ;;  %v3542_v50 = vsub.f32 %v2222_v47, %v2222_v47  ;;  %v3546_v53 = vsub.f32 %v170_v38, %v930_v42  ;;  %vm133_vm3 = vcmp.eq.s32.totalorder %v3416_v5, %v3453_v16  ;;  %2505 = vmatprep.subr.mxu0 %v4284_v3 }
  0x37   :  { %vm134_vm4 = vcmp.eq.s32.totalorder %v3418_v6, %v3453_v16  ;;  %vm69_vm7 = vcmp.eq.s32.totalorder %v3424_v9, %v3429_v10  ;;  %v3556_v55 = vsub.f32 %v171_v39, %v933_v43  ;;  %v2242_v56 = vsel %vm133_vm3, 1.0, %v4284_v3 }
  0x38   :  { %3047 = vmatpush3.bf16.msra.mxu1 %v3537_v49  ;;  %v2243_v57 = vsel %vm134_vm4, 1.0, %v4284_v3  ;;  %v3561_v58 = vsel %vm69_vm7, 1.0, %v4284_v3  ;;  %v4257_v59 = vand.u32 4294901760, %v3542_v50  ;;  %v3564_v60 = vsub.f32 %v2223_v48, %v2223_v48 }
  0x39   :  { %3048 = vmatprep.subr.bf16.mxu1 %v4267_v1  ;;  %v172_v61 = vsub.f32 %v2228_v51, %v2242_v56  ;;  %v173_v62 = vsub.f32 %v2229_v52, %v2243_v57  ;;  %v206_v0 = vsel %vm204_vm11, %v3561_v58, 0  ;;  %2506 = vmatpush3.msk.msra.mxu0 %vm204_vm11, %v3561_v58  ;;  %v190_v2 = vsel %vm188_vm12, %v183_v54, 0  ;;  %v185_v54 = vld [vmem:[#allocation2 + $0x10] sm:$0xff] }
  0x3a   :  { %vm92_vm8 = vcmp.eq.s32.totalorder %v3420_v7, %v3448_v15  ;;  %vm93_vm9 = vcmp.eq.s32.totalorder %v3422_v8, %v3448_v15  ;;  %v3576_v6 = vand.u32 4294901760, %v190_v2  ;;  %3000 = vmatprep.subr.bf16.mxu0 %v4267_v1  ;;  %vm135_vm10 = vcmp.eq.s32.totalorder %v3420_v7, %v3453_v16 }
  0x3b   :  { %v936_v4 = vand.u32 4294901760, %v172_v61  ;;  %v939_v5 = vand.u32 4294901760, %v173_v62  ;;  %v2230_v10 = vsel %vm92_vm8, 1.0, %v4284_v3  ;;  %v2231_v17 = vsel %vm93_vm9, 1.0, %v4284_v3 }
  0x3c   :  { %vm136_vm13 = vcmp.eq.s32.totalorder %v3422_v8, %v3453_v16  ;;  %v193_v18 = vsel %vm188_vm12, %v184_v63, 0  ;;  %v4254_v20 = vand.u32 4294901760, %v3564_v60  ;;  %v3589_v32 = vsub.f32 %v206_v0, %v206_v0 }
  0x3d   :  { %v3587_v21 = vpack.c.bf16 %v939_v5, %v936_v4  ;;  %v3592_v33 = vsub.f32 %v190_v2, %v3576_v6  ;;  %v2244_v34 = vsel %vm135_vm10, 1.0, %v4284_v3  ;;  %v2245_v35 = vsel %vm136_vm13, 1.0, %v4284_v3 }
  0x3e   :  { %v3596_v38 = vand.u32 4294901760, %v193_v18  ;;  %vm94_vm14 = vcmp.eq.s32.totalorder %v3424_v9, %v3448_v15  ;;  %v174_v8 = vsub.f32 %v2230_v10, %v2244_v34  ;;  %v175_v39 = vsub.f32 %v2231_v17, %v2245_v35  ;;  %v186_v35 = vld [vmem:[#allocation2 + $0x18] sm:$0xff] }
  0x3f   :  { %3050 = vmatpush3.bf16.msra.mxu1 %v3587_v21  ;;  %v4250_v7 = vand.u32 4294901760, %v3592_v33  ;;  %vm95_vm15 = vcmp.eq.s32.totalorder %v3431_v11, %v3448_v15  ;;  %v2232_v43 = vsel %vm94_vm14, 1.0, %v4284_v3  ;;  %vm137_vm1 = vcmp.eq.s32.totalorder %v3424_v9, %v3453_v16 }
  0x40   :  { %4297 = vst [vmem:[#allocation8_spill] sm:$0xff] %v3596_v38  ;;  %3051 = vmatprep.subr.bf16.mxu1 %v4267_v1  ;;  %v3606_v42 = vsub.f32 %v193_v18, %v3596_v38  ;;  %v2233_v47 = vsel %vm95_vm15, 1.0, %v4284_v3  ;;  %v942_v51 = vand.u32 4294901760, %v174_v8  ;;  %v945_v52 = vand.u32 4294901760, %v175_v39 }
  0x41   :  { %v283_v48 = vsub.f32 %v3592_v33, %v4250_v7  ;;  %vm138_vm3 = vcmp.eq.s32.totalorder %v3431_v11, %v3453_v16  ;;  %v3617_v56 = vsub.f32 %v172_v61, %v936_v4  ;;  %v2246_v63 = vsel %vm137_vm1, 1.0, %v4284_v3 }
  0x42   :  { %v4248_v57 = vand.u32 4294901760, %v3606_v42  ;;  %v2247_v0 = vsel %vm138_vm3, 1.0, %v4284_v3  ;;  %v3622_v2 = vsub.f32 %v173_v62, %v939_v5  ;;  %v3624_v10 = vpack.c.bf16 %v945_v52, %v942_v51 }
  0x43   :  { %v284_v9 = vand.u32 4294901760, %v283_v48  ;;  %v3001_v17 = vpack.c.bf16 %v342_v46, %v335_v45  ;;  %v176_v61 = vsub.f32 %v2232_v43, %v2246_v63  ;;  %v177_v4 = vsub.f32 %v2233_v47, %v2247_v0 }
  0x44   :  { %4298 = vst [vmem:[#allocation9_spill] sm:$0xff] %v3624_v10  ;;  %v293_v11 = vsub.f32 %v3606_v42, %v4248_v57  ;;  %v196_v18 = vsel %vm188_vm12, %v185_v54, 0  ;;  %3053 = vmatpush3.bf16.msra.mxu1 %v3624_v10  ;;  %vm96_vm4 = vcmp.eq.s32.totalorder %v3433_v12, %v3448_v15  ;;  %vm97_vm7 = vcmp.eq.s32.totalorder %v3435_v13, %v3448_v15 }
  0x45   :  { %2508 = vmatmul.mubr.f32.vlgmr.msra.gmra.mrb[0].mxu0 %v284_v9  ;;  %v3635_v62 = vand.u32 4294901760, %v196_v18  ;;  %vm139_vm8 = vcmp.eq.s32.totalorder %v3433_v12, %v3453_v16  ;;  %3054 = vmatprep.subr.bf16.mxu1 %v4267_v1  ;;  %v948_v37 = vand.u32 4294901760, %v176_v61  ;;  %v951_v45 = vand.u32 4294901760, %v177_v4 }
  0x46   :  { %2510 = vmatprep.mubr.msk.f32.mxu0 %vm3361_vm0, %v4284_v3  ;;  %v294_v36 = vand.u32 4294901760, %v293_v11  ;;  %v2234_v46 = vsel %vm96_vm4, 1.0, %v4284_v3  ;;  %3002 = vmatpush3.bf16.msra.mxu0 %v3001_v17  ;;  %v2235_v34 = vsel %vm97_vm7, 1.0, %v4284_v3  ;;  %vm140_vm9 = vcmp.eq.s32.totalorder %v3435_v13, %v3453_v16 }
  0x47   :  { %v3648_v5 = vsub.f32 %v196_v18, %v3635_v62  ;;  %v2248_v12 = vsel %vm139_vm8, 1.0, %v4284_v3  ;;  %v3654_v43 = vsub.f32 %v174_v8, %v942_v51  ;;  %v3656_v47 = vsub.f32 %v175_v39, %v945_v52  ;;  %3003 = vmatprep.subr.bf16.mxu0 %v4267_v1 }
  0x48   :  { %v3658_v48 = vpack.c.bf16 %v951_v45, %v948_v37  ;;  %v2249_v54 = vsel %vm140_vm9, 1.0, %v4284_v3  ;;  %v178_v0 = vsub.f32 %v2234_v46, %v2248_v12  ;;  %v348_v13 = vsub.f32 %v3497_v30, %v4262_v40 }
  0x49   :  { %2511 = vmatmul.mubr.f32.gmra.mrb[2].mxu0 %v294_v36  ;;  %v4249_v63 = vand.u32 4294901760, %v3648_v5  ;;  %v179_v9 = vsub.f32 %v2235_v34, %v2249_v54  ;;  %v355_v8 = vsub.f32 %v3499_v31, %v4259_v41  ;;  %v199_v39 = vsel %vm188_vm12, %v186_v35, 0 }
  0x4a   :  { %4299 = vst [vmem:[#allocation10_spill] sm:$0xff] %v3658_v48  ;;  %3056 = vmatpush3.bf16.msra.mxu1 %v3658_v48  ;;  %2513 = vmatprep.mubr.msk.f32.mxu0 %vm3361_vm0, %v4284_v3  ;;  %vm98_vm10 = vcmp.eq.s32.totalorder %v3437_v14, %v3448_v15  ;;  %vm99_vm13 = vcmp.eq.s32.totalorder %v3476_v25, %v3448_v15  ;;  %vm909_vm14 = vcmask 818176   ;;  %v954_v52 = vand.u32 4294901760, %v178_v0 }
  0x4b   :  { %v303_v51 = vsub.f32 %v3648_v5, %v4249_v63  ;;  %3057 = vmatprep.subr.bf16.mxu1 %v4267_v1  ;;  %v957_v17 = vand.u32 4294901760, %v179_v9  ;;  %v349_v11 = vand.u32 4294901760, %v348_v13  ;;  %v3681_v18 = vsub.f32 %v176_v61, %v948_v37  ;;  %v187_v63 = vld [vmem:[#allocation2 + $0x20] sm:$0xff] }
  0x4c   :  { %v3683_v36 = vsub.f32 %v177_v4, %v951_v45  ;;  %v356_v46 = vand.u32 4294901760, %v355_v8  ;;  %v3685_v34 = vand.u32 4294901760, %v199_v39  ;;  %v2236_v54 = vsel %vm98_vm10, 1.0, %v4284_v3 }
  0x4d   :  { %v304_v12 = vand.u32 4294901760, %v303_v51  ;;  %v3687_v35 = vpack.c.bf16 %v957_v17, %v954_v52  ;;  %v2237_v57 = vsel %vm99_vm13, 1.0, %v4284_v3  ;;  %vm925_vm15 = vcmask 1043456  }
  0x4e   :  { %v3004_v7 = vpack.c.bf16 %v356_v46, %v349_v11  ;;  %v3692_v22 = vsub.f32 %v199_v39, %v3685_v34  ;;  %vm141_vm1 = vcmp.eq.s32.totalorder %v3437_v14, %v3453_v16  ;;  %vm142_vm3 = vcmp.eq.s32.totalorder %v3476_v25, %v3453_v16 }
  0x4f   :  { %4300 = vst [vmem:[#allocation11_spill] sm:$0xff] %v3687_v35  ;;  %2514 = vmatmul.mubr.f32.gmra.mrb[4].mxu0 %v304_v12  ;;  %3059 = vmatpush3.bf16.msra.mxu1 %v3687_v35  ;;  %v2250_v61 = vsel %vm141_vm1, 1.0, %v4284_v3  ;;  %v2251_v4 = vsel %vm142_vm3, 1.0, %v4284_v3  ;;  %v362_v37 = vsub.f32 %v3542_v50, %v4257_v59  ;;  %v369_v45 = vsub.f32 %v3564_v60, %v4254_v20 }
  0x50   :  { %2516 = vmatprep.mubr.msk.f32.mxu0 %vm3361_vm0, %v4284_v3  ;;  %3005 = vmatpush3.bf16.msra.mxu0 %v3004_v7  ;;  %v4253_v14 = vand.u32 4294901760, %v3692_v22  ;;  %v180_v25 = vsub.f32 %v2236_v54, %v2250_v61  ;;  %v181_v13 = vsub.f32 %v2237_v57, %v2251_v4  ;;  %v202_v8 = vsel %vm188_vm12, %v187_v63, 0  ;;  %v904_v63 = vld [vmem:[#allocation4] sm:$0xff] }
  0x51   :  { %3060 = vmatprep.subr.bf16.mxu1 %v4267_v1  ;;  %3006 = vmatprep.subr.bf16.mxu0 %v4267_v1  ;;  %v363_v39 = vand.u32 4294901760, %v362_v37  ;;  %v370_v51 = vand.u32 4294901760, %v369_v45  ;;  %v3713_v11 = vand.u32 4294901760, %v202_v8  ;;  %vm100_vm4 = vcmp.eq.s32.totalorder %v3478_v26, %v3448_v15 }
  0x52   :  { %v313_v7 = vsub.f32 %v3692_v22, %v4253_v14  ;;  %v960_v46 = vand.u32 4294901760, %v180_v25  ;;  %v963_v12 = vand.u32 4294901760, %v181_v13  ;;  %v2238_v57 = vsel %vm100_vm4, 1.0, %v4284_v3 }
  0x53   :  { %v3007_v54 = vpack.c.bf16 %v370_v51, %v363_v39  ;;  %v3722_v61 = vsub.f32 %v202_v8, %v3713_v11  ;;  %vm143_vm12 = vcmp.eq.s32.totalorder %v3478_v26, %v3453_v16  ;;  %v4256_v4 = vand.u32 4294901760, %v3589_v32 }
  0x54   :  { %v3727_v37 = vsub.f32 %v178_v0, %v954_v52  ;;  %v3729_v15 = vsub.f32 %v179_v9, %v957_v17  ;;  %v314_v45 = vand.u32 4294901760, %v313_v7  ;;  %v3731_v14 = vpack.c.bf16 %v963_v12, %v960_v46 }
  0x55   :  { %3008 = vmatpush3.bf16.msra.mxu0 %v3007_v54  ;;  %v4255_v20 = vand.u32 4294901760, %v3722_v61  ;;  %v2252_v39 = vsel %vm143_vm12, 1.0, %v4284_v3  ;;  %v376_v8 = vsub.f32 %v3589_v32, %v4256_v4  ;;  %v911_v16 = vsel %vm909_vm14, %v904_v63, 0  ;;  %v905_v4 = vld [vmem:[#allocation4 + $0x8] sm:$0xff] }
  0x56   :  { %4301 = vst [vmem:[#allocation12_spill] sm:$0xff] %v3731_v14  ;;  %2517 = vmatmul.mubr.f32.gmra.mrb[6].mxu0 %v314_v45  ;;  %3062 = vmatpush3.bf16.msra.mxu1 %v3731_v14  ;;  %v182_v26 = vsub.f32 %v2238_v57, %v2252_v39  ;;  %v3740_v0 = vand.u32 4294901760, %v911_v16  ;;  %v4258_v9 = vand.u32 4294901760, %v3546_v53  ;;  %v4260_v52 = vand.u32 4294901760, %v3556_v55  ;;  %v4334_v19 = vld [vmem:[#allocation11_spill] sm:$0xff] }
  0x57   :  { %2519 = vmatprep.mubr.msk.f32.mxu0 %vm3361_vm0, %v4284_v3  ;;  %v323_v17 = vsub.f32 %v3722_v61, %v4255_v20  ;;  %2691 = vmatprep.subr.mxu1 %v4284_v3  ;;  %v377_v51 = vand.u32 4294901760, %v376_v8  ;;  %v4261_v7 = vand.u32 4294901760, %v3617_v56  ;;  %v4263_v57 = vand.u32 4294901760, %v3622_v2 }
  0x58   :  { %v3753_v63 = vsel %vm925_vm15, %v182_v26, 0  ;;  %2534 = vmatprep.subr.mxu0 %v4284_v3  ;;  %v3757_v54 = vsub.f32 %v911_v16, %v3740_v0  ;;  %v1061_v45 = vsub.f32 %v3546_v53, %v4258_v9  ;;  %v1068_v39 = vsub.f32 %v3556_v55, %v4260_v52 }
  0x59   :  { %v324_v8 = vand.u32 4294901760, %v323_v17  ;;  %v3766_v20 = vand.u32 4294901760, %v3753_v63  ;;  %2535 = vmatpush3.msra.mxu0 %v377_v51  ;;  %v1075_v26 = vsub.f32 %v3617_v56, %v4261_v7  ;;  %v1082_v16 = vsub.f32 %v3622_v2, %v4263_v57 }
  0x5a   :  { %v3774_v59 = vsub.f32 %v180_v25, %v960_v46  ;;  %v4264_v9 = vand.u32 4294901760, %v3757_v54  ;;  %v1062_v41 = vand.u32 4294901760, %v1061_v45  ;;  %v1069_v52 = vand.u32 4294901760, %v1068_v39  ;;  %3009 = vmatprep.subr.bf16.mxu0 %v4267_v1  ;;  %v906_v45 = vld [vmem:[#allocation4 + $0x10] sm:$0xff] }
  0x5b   :  { %4302 = vst [vmem:[#allocation13_spill] sm:$0xff] %v3766_v20  ;;  %v3778_v17 = vsub.f32 %v181_v13, %v963_v12  ;;  %2520 = vmatmul.mubr.f32.gmra.mrb[8].mxu0 %v324_v8  ;;  %2692 = vmatpush3.msra.mxu1 %v3766_v20  ;;  %v1076_v51 = vand.u32 4294901760, %v1075_v26  ;;  %v1083_v7 = vand.u32 4294901760, %v1082_v16  ;;  %v4270_v40 = vand.u32 4294901760, %v3654_v43 }
  0x5c   :  { %3063 = vmatprep.subr.bf16.mxu1 %v4267_v1  ;;  %2536 = vmatprep.mubr.msk.f32.mxu0 %vm3361_vm0, %v4284_v3  ;;  %v1010_v25 = vsub.f32 %v3757_v54, %v4264_v9  ;;  %v3010_v13 = vpack.c.bf16 %v3474_v24, %v3472_v23  ;;  %v4269_v46 = vand.u32 4294901760, %v3656_v47  ;;  %v914_v12 = vsel %vm909_vm14, %v905_v4, 0  ;;  %v907_v1 = vld [vmem:[#allocation4 + $0x18] sm:$0xff] }
  0x5d   :  { %v3064_v39 = vpack.c.bf16 %v1069_v52, %v1062_v41  ;;  %v3067_v8 = vpack.c.bf16 %v1083_v7, %v1076_v51  ;;  %v1089_v26 = vsub.f32 %v3654_v43, %v4270_v40  ;;  %v3795_v16 = vand.u32 4294901760, %v914_v12  ;;  %v4335_v27 = vld [vmem:[#allocation12_spill] sm:$0xff] }
  0x5e   :  { %v1011_v57 = vand.u32 4294901760, %v1010_v25  ;;  %v1096_v9 = vsub.f32 %v3656_v47, %v4269_v46  ;;  %v4271_v29 = vand.u32 4294901760, %v3681_v18  ;;  %v4272_v28 = vand.u32 4294901760, %v3683_v36 }
  0x5f   :  { %2537 = vmatmul.mubr.f32.vlgmr.msra.gmra.mrb[0].mxu0 %v3576_v6  ;;  %v1090_v41 = vand.u32 4294901760, %v1089_v26  ;;  %v3804_v4 = vsub.f32 %v914_v12, %v3795_v16  ;;  %v3013_v52 = vpack.c.bf16 %v3499_v31, %v3497_v30  ;;  %v917_v7 = vsel %vm909_vm14, %v906_v45, 0 }
  0x60   :  { %2694 = vmatmul.mubr.f32.vlgmr.msra.gmra.mrb[0].mxu1 %v1011_v57  ;;  %2539 = vmatprep.mubr.msk.f32.mxu0 %vm3361_vm0, %v4284_v3  ;;  %v1097_v51 = vand.u32 4294901760, %v1096_v9  ;;  %v1103_v25 = vsub.f32 %v3681_v18, %v4271_v29  ;;  %v1110_v26 = vsub.f32 %v3683_v36, %v4272_v28  ;;  %v3817_v12 = vand.u32 4294901760, %v917_v7  ;;  %v908_v57 = vld [vmem:[#allocation4 + $0x20] sm:$0xff] }
  0x61   :  { %3065 = vmatpush3.bf16.msra.mxu1 %v3064_v39  ;;  %3011 = vmatpush3.bf16.msra.mxu0 %v3010_v13  ;;  %v4279_v46 = vand.u32 4294901760, %v3804_v4  ;;  %v920_v9 = vsel %vm909_vm14, %v907_v1, 0  ;;  %v4303_v40 = vmov 0.0|0.0   ;;  %v3016_v39 = vpack.c.bf16 %v3564_v60, %v3542_v50 }
  0x62   :  { %3066 = vmatprep.subr.bf16.mxu1 %v4303_v40  ;;  %2696 = vmatprep.mubr.msk.f32.mxu1 %vm3361_vm0, %v4284_v3  ;;  %v3827_v29 = vsub.f32 %v917_v7, %v3817_v12  ;;  %v1104_v1 = vand.u32 4294901760, %v1103_v25  ;;  %v1111_v28 = vand.u32 4294901760, %v1110_v26  ;;  %v3836_v45 = vand.u32 4294901760, %v920_v9  ;;  %v4336_v44 = vld [vmem:[#allocation13_spill] sm:$0xff] }
  0x63   :  { %2540 = vmatmul.mubr.f32.gmra.mrb[2].mxu0 %v3596_v38  ;;  %v1020_v13 = vsub.f32 %v3804_v4, %v4279_v46  ;;  %3012 = vmatprep.subr.bf16.mxu0 %v4303_v40  ;;  %v4304_v14 = vand.u32 4294901760, %v3727_v37  ;;  %v4305_v48 = vand.u32 4294901760, %v3729_v15  ;;  %v1130_v38 = vand.u32 4294901760, %v3774_v59 }
  0x64   :  { %2542 = vmatprep.mubr.msk.f32.mxu0 %vm3361_vm0, %v4284_v3  ;;  %v4286_v7 = vand.u32 4294901760, %v3827_v29  ;;  %v3070_v25 = vpack.c.bf16 %v1097_v51, %v1090_v41  ;;  %v3849_v10 = vsub.f32 %v920_v9, %v3836_v45  ;;  %v1137_v3 = vand.u32 4294901760, %v3778_v17 }
  0x65   :  { %v1117_v35 = vsub.f32 %v3727_v37, %v4304_v14  ;;  %v1124_v46 = vsub.f32 %v3729_v15, %v4305_v48  ;;  %3068 = vmatpush3.bf16.msra.mxu1 %v3067_v8  ;;  %v1021_v26 = vand.u32 4294901760, %v1020_v13  ;;  %3014 = vmatpush3.bf16.msra.mxu0 %v3013_v52  ;;  %v923_v48 = vsel %vm909_vm14, %v908_v57, 0 }
  0x66   :  { %3069 = vmatprep.subr.bf16.mxu1 %v4303_v40  ;;  %v1030_v14 = vsub.f32 %v3827_v29, %v4286_v7  ;;  %3015 = vmatprep.subr.bf16.mxu0 %v4303_v40  ;;  %v3860_v8 = vsub.f32 %v3753_v63, %v3766_v20  ;;  %v3073_v41 = vpack.c.bf16 %v1111_v28, %v1104_v1  ;;  %v4287_v52 = vand.u32 4294901760, %v3849_v10 }
  0x67   :  { %2543 = vmatmul.mubr.f32.gmra.mrb[4].mxu0 %v3635_v62  ;;  %2697 = vmatmul.mubr.f32.gmra.mrb[2].mxu1 %v1021_v26  ;;  %v3864_v51 = vand.u32 4294901760, %v923_v48  ;;  %v4306_v9 = vmov 0.0   ;;  %v1118_v57 = vand.u32 4294901760, %v1117_v35  ;;  %v1125_v7 = vand.u32 4294901760, %v1124_v46 }
  0x68   :  { %2545 = vmatprep.mubr.msk.f32.mxu0 %vm3361_vm0, %v4306_v9  ;;  %2699 = vmatprep.mubr.msk.f32.mxu1 %vm3361_vm0, %v4306_v9  ;;  %v1031_v13 = vand.u32 4294901760, %v1030_v14  ;;  %v1131_v63 = vsub.f32 %v3774_v59, %v1130_v38  ;;  %v1040_v28 = vsub.f32 %v3849_v10, %v4287_v52  ;;  %v1138_v1 = vsub.f32 %v3778_v17, %v1137_v3 }
  0x69   :  { %3071 = vmatpush3.bf16.msra.mxu1 %v3070_v25  ;;  %3017 = vmatpush3.bf16.msra.mxu0 %v3016_v39  ;;  %v3876_v26 = vsub.f32 %v923_v48, %v3864_v51  ;;  %v3076_v39 = vpack.c.bf16 %v1125_v7, %v1118_v57  ;;  %v4307_v48 = vand.u32 4294901760, %v3472_v23  ;;  %v4308_v52 = vand.u32 4294901760, %v3474_v24 }
  0x6a   :  { %3072 = vmatprep.subr.bf16.mxu1 %v4303_v40  ;;  %2563 = vmatprep.subr.mxu0 %v4306_v9  ;;  %v1041_v35 = vand.u32 4294901760, %v1040_v28  ;;  %v1132_v25 = vand.u32 4294901760, %v1131_v63  ;;  %v4309_v57 = vand.u32 4294901760, %v3497_v30  ;;  %v4310_v63 = vand.u32 4294901760, %v3499_v31 }
  0x6b   :  { %2546 = vmatmul.mubr.f32.gmra.mrb[6].mxu0 %v3685_v34  ;;  %2700 = vmatmul.mubr.f32.gmra.mrb[4].mxu1 %v1031_v13  ;;  %v4290_v46 = vand.u32 4294901760, %v3876_v26  ;;  %v3891_v20 = vpack.c.bf16 %v4308_v52, %v4307_v48  ;;  %v1139_v13 = vand.u32 4294901760, %v1138_v1  ;;  %v4311_v23 = vand.u32 4294901760, %v3542_v50 }
  0x6c   :  { %2548 = vmatprep.mubr.msk.f32.mxu0 %vm3361_vm0, %v4306_v9  ;;  %2702 = vmatprep.mubr.msk.f32.mxu1 %vm3361_vm0, %v4306_v9  ;;  %v3901_v28 = vpack.c.bf16 %v4310_v63, %v4309_v57  ;;  %v4312_v24 = vand.u32 4294901760, %v3564_v60  ;;  %v4314_v1 = vand.u32 4294901760, %v3556_v55  ;;  %v4315_v30 = vand.u32 4294901760, %v3617_v56 }
  0x6d   :  { %3074 = vmatpush3.bf16.msra.mxu1 %v3073_v41  ;;  %2564 = vmatpush3.msra.mxu0 %v3589_v32  ;;  %v1050_v7 = vsub.f32 %v3876_v26, %v4290_v46  ;;  %v4313_v41 = vand.u32 4294901760, %v3546_v53  ;;  %v4316_v31 = vand.u32 4294901760, %v3622_v2  ;;  %v4317_v50 = vand.u32 4294901760, %v3654_v43 }
  0x6e   :  { %v3907_v52 = vpack.c.bf16 %v4312_v24, %v4311_v23  ;;  %3075 = vmatprep.subr.bf16.mxu1 %v4303_v40  ;;  %3018 = vmatprep.subr.bf16.mxu0 %v4303_v40  ;;  %v4318_v60 = vand.u32 4294901760, %v3656_v47  ;;  %v4319_v24 = vand.u32 4294901760, %v3681_v18  ;;  %v4321_v46 = vand.u32 4294901760, %v3727_v37 }
  0x6f   :  { %v3915_v48 = vpack.c.bf16 %v4314_v1, %v4313_v41  ;;  %v3921_v57 = vpack.c.bf16 %v4316_v31, %v4315_v30  ;;  %2549 = vmatmul.mubr.f32.gmra.mrb[8].mxu0 %v3713_v11  ;;  %2703 = vmatmul.mubr.f32.gmra.mrb[6].mxu1 %v1041_v35  ;;  %v1051_v23 = vand.u32 4294901760, %v1050_v7  ;;  %v4320_v41 = vand.u32 4294901760, %v3683_v36 }
  0x70   :  { %v3927_v63 = vpack.c.bf16 %v4318_v60, %v4317_v50  ;;  %v4322_v30 = vand.u32 4294901760, %v3729_v15  ;;  %v3942_v14 = vpack.c.bf16 %v1137_v3, %v1130_v38  ;;  %2565 = vmatprep.mubr.msk.f32.mxu0 %vm3361_vm0, %v4306_v9  ;;  %2705 = vmatprep.mubr.msk.f32.mxu1 %vm3361_vm0, %v4306_v9  ;;  %v3079_v35 = vpack.c.bf16 %v1139_v13, %v1132_v25 }
  0x71   :  { %v3934_v1 = vpack.c.bf16 %v4320_v41, %v4319_v24  ;;  %3077 = vmatpush3.bf16.msra.mxu1 %v3076_v39  ;;  %v4323_v7 = vand.u32 4294901760, %v3860_v8  ;;  %v4324_v38 = vmov 1.0|1.0   ;;  %v3085_v39 = vpack.c.bf16 %v3622_v2, %v3617_v56 }
  0x72   :  { %v3940_v31 = vpack.c.bf16 %v4322_v30, %v4321_v46  ;;  %3078 = vmatprep.subr.bf16.mxu1 %v4303_v40  ;;  %v3082_v46 = vpack.c.bf16 %v3556_v55, %v3546_v53  ;;  %v3088_v53 = vpack.c.bf16 %v3656_v47, %v3654_v43  ;;  %v3091_v55 = vpack.c.bf16 %v3683_v36, %v3681_v18  ;;  %v4333_v47 = vld [vmem:[#allocation10_spill] sm:$0xff] }
  0x73   :  { %v1145_v50 = vsub.f32 %v3860_v8, %v4323_v7  ;;  %2566 = vmatmul.mubr.f32.vlgmr.msra.gmra.mrb[0].mxu0 %v3592_v33  ;;  %2706 = vmatmul.mubr.f32.gmra.mrb[8].mxu1 %v1051_v23  ;;  %v4325_v56 = vand.u32 4294901760, %v3592_v33  ;;  %v3094_v2 = vpack.c.bf16 %v3729_v15, %v3727_v37  ;;  %v4326_v33 = vand.u32 4294901760, %v3606_v42 }
  0x74   :  { %2568 = vmatprep.mubr.msk.f32.mxu0 %vm3361_vm0, %v4306_v9  ;;  %2734 = vmatprep.mubr.msk.f32.mxu1 %vm3361_vm0, %v4306_v9  ;;  %v3097_v43 = vpack.c.bf16 %v3778_v17, %v3774_v59  ;;  %v4328_v59 = vand.u32 4294901760, %v3692_v22  ;;  %v4337_v18 = vand.u32 4294901760, %v3757_v54  ;;  %v4340_v36 = vand.u32 4294901760, %v3849_v10 }
  0x75   :  { %3080 = vmatpush3.bf16.msra.mxu1 %v3079_v35  ;;  %v1146_v3 = vand.u32 4294901760, %v1145_v50  ;;  %3020 = vmatpush3.bf16.msk.msra.mxu0 %vm3457_vm5, %v4324_v38  ;;  %v3364_v60 = vmov 0  }
  0x76   :  { %2732 = vmatprep.subr.mxu1 %v4306_v9  ;;  %3021 = vmatprep.subr.bf16.mxu0 %v4303_v40 }
  0x77   :  { %2569 = vmatmul.mubr.f32.gmra.mrb[2].mxu0 %v3606_v42  ;;  %v4329_v42 = vand.u32 4294901760, %v3589_v32  ;;  %v4332_v32 = vld [vmem:[#allocation8_spill] sm:$0xff] }
  0x78   :  { %2571 = vmatprep.mubr.msk.f32.mxu0 %vm3361_vm0, %v4306_v9 }
  0x79   :  { %2733 = vmatpush3.msra.mxu1 %v1146_v3  ;;  %3023 = vmatpush3.bf16.msk.msra.mxu0 %vm3487_vm6, %v4324_v38 }
  0x7a   :  { %3081 = vmatprep.subr.bf16.mxu1 %v4303_v40  ;;  %2735 = vmatmul.mubr.f32.vlgmr.msra.gmra.mrb[0].mxu1 %v3740_v0 }
  0x7b   :  { %3083 = vmatpush3.bf16.msra.mxu1 %v3082_v46  ;;  %2572 = vmatmul.mubr.f32.gmra.mrb[4].mxu0 %v3648_v5 }
  0x7c   :  { %3084 = vmatprep.subr.bf16.mxu1 %v4303_v40  ;;  %2574 = vmatprep.mubr.msk.f32.mxu0 %vm3361_vm0, %v4306_v9 }
  0x7d   :  { %3024 = vmatprep.subr.bf16.mxu0 %v4303_v40  ;;  %2737 = vmatprep.mubr.msk.f32.mxu1 %vm3361_vm0, %v4306_v9 }
  0x7e   :  { %3026 = vmatpush3.bf16.msk.msra.mxu0 %vm3529_vm2, %v4324_v38  ;;  %2738 = vmatmul.mubr.f32.gmra.mrb[2].mxu1 %v3795_v16 }
  0x7f   :  { %3086 = vmatpush3.bf16.msra.mxu1 %v3085_v39  ;;  %2575 = vmatmul.mubr.f32.gmra.mrb[6].mxu0 %v3692_v22  ;;  %v4331_v22 = vld [vmem:[#allocation9_spill] sm:$0xff] }
  0x80   :  { %3087 = vmatprep.subr.bf16.mxu1 %v4303_v40  ;;  %2577 = vmatprep.mubr.msk.f32.mxu0 %vm3361_vm0, %v4306_v9 }
  0x81   :  { %2592 = vmatprep.subr.mxu0 %v4306_v9  ;;  %2740 = vmatprep.mubr.msk.f32.mxu1 %vm3361_vm0, %v4306_v9 }
  0x82   :  { %2593 = vmatpush3.msk.msra.mxu0 %vm204_vm11, %v3561_v58  ;;  %2741 = vmatmul.mubr.f32.gmra.mrb[4].mxu1 %v3817_v12 }
  0x83   :  { %3089 = vmatpush3.bf16.msra.mxu1 %v3088_v53  ;;  %2578 = vmatmul.mubr.f32.gmra.mrb[8].mxu0 %v3722_v61 }
  0x84   :  { %3090 = vmatprep.subr.bf16.mxu1 %v4303_v40  ;;  %2594 = vmatprep.mubr.msk.f32.mxu0 %vm3361_vm0, %v4306_v9 }
  0x85   :  { %2743 = vmatprep.mubr.msk.f32.mxu1 %vm3361_vm0, %v4306_v9  ;;  %3027 = vmatprep.subr.bf16.mxu0 %v4303_v40 }
  0x86   :  { %2744 = vmatmul.mubr.f32.gmra.mrb[6].mxu1 %v3836_v45 }
  0x87   :  { %3092 = vmatpush3.bf16.msra.mxu1 %v3091_v55  ;;  %2595 = vmatmul.mubr.f32.vlgmr.msra.gmra.mrb[0].mxu0 %v4325_v56 }
  0x88   :  { %3093 = vmatprep.subr.bf16.mxu1 %v4303_v40  ;;  %2597 = vmatprep.mubr.msk.f32.mxu0 %vm3361_vm0, %v4306_v9 }
  0x89   :  { %2746 = vmatprep.mubr.msk.f32.mxu1 %vm3361_vm0, %v4306_v9  ;;  %3029 = vmatpush3.bf16.msra.mxu0 %v3891_v20  ;;  %v4327_v20 = vand.u32 4294901760, %v3648_v5  ;;  %v4330_v5 = vand.u32 4294901760, %v3722_v61 }
  0x8a   :  { %2747 = vmatmul.mubr.f32.gmra.mrb[8].mxu1 %v3864_v51  ;;  %3030 = vmatprep.subr.bf16.mxu0 %v4303_v40 }
  0x8b   :  { %3095 = vmatpush3.bf16.msra.mxu1 %v3094_v2  ;;  %2598 = vmatmul.mubr.f32.gmra.mrb[2].mxu0 %v4326_v33 }
  0x8c   :  { %3096 = vmatprep.subr.bf16.mxu1 %v4303_v40  ;;  %2600 = vmatprep.mubr.msk.f32.mxu0 %vm3361_vm0, %v4306_v9 }
  0x8d   :  { %2775 = vmatprep.mubr.msk.f32.mxu1 %vm3361_vm0, %v4306_v9  ;;  %3032 = vmatpush3.bf16.msra.mxu0 %v3901_v28 }
  0x8e   :  { %3033 = vmatprep.subr.bf16.mxu0 %v4303_v40 }
  0x8f   :  { %3098 = vmatpush3.bf16.msra.mxu1 %v3097_v43  ;;  %2601 = vmatmul.mubr.f32.gmra.mrb[4].mxu0 %v4327_v20 }
  0x90   :  { %2773 = vmatprep.subr.mxu1 %v4306_v9  ;;  %2603 = vmatprep.mubr.msk.f32.mxu0 %vm3361_vm0, %v4306_v9 }
  0x91   :  { %3035 = vmatpush3.bf16.msra.mxu0 %v3907_v52 }
  0x92   :  { %2621 = vmatprep.subr.mxu0 %v4306_v9 }
  0x93   :  { %2774 = vmatpush3.msra.mxu1 %v3860_v8  ;;  %2604 = vmatmul.mubr.f32.gmra.mrb[6].mxu0 %v4328_v59 }
  0x94   :  { %3099 = vmatprep.subr.bf16.mxu1 %v4303_v40  ;;  %2776 = vmatmul.mubr.f32.vlgmr.msra.gmra.mrb[0].mxu1 %v3757_v54 }
  0x95   :  { %3101 = vmatpush3.bf16.msra.mxu1 %v3537_v49  ;;  %2606 = vmatprep.mubr.msk.f32.mxu0 %vm3361_vm0, %v4306_v9 }
  0x96   :  { %3102 = vmatprep.subr.bf16.mxu1 %v4303_v40  ;;  %2622 = vmatpush3.msra.mxu0 %v4329_v42 }
  0x97   :  { %2607 = vmatmul.mubr.f32.gmra.mrb[8].mxu0 %v4330_v5  ;;  %2778 = vmatprep.mubr.msk.f32.mxu1 %vm3361_vm0, %v4306_v9 }
  0x98   :  { %2623 = vmatprep.mubr.msk.f32.mxu0 %vm3361_vm0, %v4306_v9  ;;  %2779 = vmatmul.mubr.f32.gmra.mrb[2].mxu1 %v3804_v4 }
  0x99   :  { %3104 = vmatpush3.bf16.msra.mxu1 %v3587_v21  ;;  %2781 = vmatprep.mubr.msk.f32.mxu1 %vm3361_vm0, %v4306_v9 }
  0x9a   :  { %3105 = vmatprep.subr.bf16.mxu1 %v4303_v40  ;;  %3036 = vmatprep.subr.bf16.mxu0 %v4303_v40 }
  0x9b   :  { %2624 = vmatmul.mubr.f32.vlgmr.msra.gmra.mrb[0].mxu0 %v3576_v6 }
  0x9c   :  { %2626 = vmatprep.mubr.msk.f32.mxu0 %vm3361_vm0, %v4306_v9  ;;  %2782 = vmatmul.mubr.f32.gmra.mrb[4].mxu1 %v3827_v29 }
  0x9d   :  { %3107 = vmatpush3.bf16.msra.mxu1 %v4331_v22  ;;  %3038 = vmatpush3.bf16.msk.msra.mxu0 %vm3457_vm5, %v4324_v38  ;;  %vm1708_vm5 = vcmask 326656  }
  0x9e   :  { %3108 = vmatprep.subr.bf16.mxu1 %v4303_v40  ;;  %2784 = vmatprep.mubr.msk.f32.mxu1 %vm3361_vm0, %v4306_v9 }
  0x9f   :  { %2627 = vmatmul.mubr.f32.gmra.mrb[2].mxu0 %v4332_v32  ;;  %3039 = vmatprep.subr.bf16.mxu0 %v4303_v40 }
  0xa0   :  { %2629 = vmatprep.mubr.msk.f32.mxu0 %vm3361_vm0, %v4306_v9  ;;  %2785 = vmatmul.mubr.f32.gmra.mrb[6].mxu1 %v3849_v10  ;;  %v4342_v10 = vmov %v4323_v7 }
  0xa1   :  { %3110 = vmatpush3.bf16.msra.mxu1 %v4333_v47  ;;  %3041 = vmatpush3.bf16.msk.msra.mxu0 %vm3487_vm6, %v4324_v38 }
  0xa2   :  { %3111 = vmatprep.subr.bf16.mxu1 %v4303_v40  ;;  %2787 = vmatprep.mubr.msk.f32.mxu1 %vm3361_vm0, %v4306_v9 }
  0xa3   :  { %2630 = vmatmul.mubr.f32.gmra.mrb[4].mxu0 %v3635_v62  ;;  %3042 = vmatprep.subr.bf16.mxu0 %v4303_v40 }
  0xa4   :  { %2632 = vmatprep.mubr.msk.f32.mxu0 %vm3361_vm0, %v4306_v9  ;;  %2788 = vmatmul.mubr.f32.gmra.mrb[8].mxu1 %v3876_v26 }
  0xa5   :  { %3113 = vmatpush3.bf16.msra.mxu1 %v4334_v19  ;;  %3044 = vmatpush3.bf16.msk.msra.mxu0 %vm3529_vm2, %v4324_v38 }
  0xa6   :  { %3114 = vmatprep.subr.bf16.mxu1 %v4303_v40  ;;  %2816 = vmatprep.mubr.msk.f32.mxu1 %vm3361_vm0, %v4306_v9 }
  0xa7   :  { %2633 = vmatmul.mubr.f32.gmra.mrb[6].mxu0 %v3685_v34  ;;  %2650 = vmatprep.subr.mxu0 %v4306_v9 }
  0xa8   :  { %2635 = vmatprep.mubr.msk.f32.mxu0 %vm3361_vm0, %v4306_v9 }
  0xa9   :  { %3116 = vmatpush3.bf16.msra.mxu1 %v4335_v27  ;;  %2651 = vmatpush3.msk.msra.mxu0 %vm204_vm11, %v3561_v58  ;;  %v4338_v58 = vand.u32 4294901760, %v3804_v4 }
  0xaa   :  { %2814 = vmatprep.subr.mxu1 %v4306_v9  ;;  %3159 = vmatprep.subr.bf16.mxu0 %v4303_v40 }
  0xab   :  { %2636 = vmatmul.mubr.f32.gmra.mrb[8].mxu0 %v3713_v11 }
  0xac   :  { %2652 = vmatprep.mubr.msk.f32.mxu0 %vm3361_vm0, %v4306_v9 }
  0xad   :  { %2815 = vmatpush3.msra.mxu1 %v4336_v44 }
  0xae   :  { %3117 = vmatprep.subr.bf16.mxu1 %v4303_v40  ;;  %2817 = vmatmul.mubr.f32.vlgmr.msra.gmra.mrb[0].mxu1 %v4337_v18 }
  0xaf   :  { %3119 = vmatpush3.bf16.msra.mxu1 %v3915_v48  ;;  %2653 = vmatmul.mubr.f32.vlgmr.msra.gmra.mrb[0].mxu0 %v3576_v6  ;;  %v4339_v6 = vand.u32 4294901760, %v3827_v29  ;;  %v4341_v29 = vand.u32 4294901760, %v3876_v26 }
  0xb0   :  { %3120 = vmatprep.subr.bf16.mxu1 %v4303_v40  ;;  %2655 = vmatprep.mubr.msk.f32.mxu0 %vm3361_vm0, %v4306_v9 }
  0xb1   :  { %2819 = vmatprep.mubr.msk.f32.mxu1 %vm3361_vm0, %v4306_v9 }
  0xb2   :  { %2820 = vmatmul.mubr.f32.gmra.mrb[2].mxu1 %v4338_v58 }
  0xb3   :  { %3122 = vmatpush3.bf16.msra.mxu1 %v3921_v57  ;;  %2656 = vmatmul.mubr.f32.gmra.mrb[2].mxu0 %v4332_v32 }
  0xb4   :  { %3123 = vmatprep.subr.bf16.mxu1 %v4303_v40  ;;  %2658 = vmatprep.mubr.msk.f32.mxu0 %vm3361_vm0, %v4306_v9 }
  0xb5   :  { %2822 = vmatprep.mubr.msk.f32.mxu1 %vm3361_vm0, %v4306_v9 }
  0xb6   :  { %2823 = vmatmul.mubr.f32.gmra.mrb[4].mxu1 %v4339_v6 }
  0xb7   :  { %3125 = vmatpush3.bf16.msra.mxu1 %v3927_v63  ;;  %2659 = vmatmul.mubr.f32.gmra.mrb[4].mxu0 %v3635_v62  ;;  %v1710_v63 = vsel %vm1708_vm5, 1.0, %v3364_v60 }
  0xb8   :  { %3126 = vmatprep.subr.bf16.mxu1 %v4303_v40  ;;  %2661 = vmatprep.mubr.msk.f32.mxu0 %vm3361_vm0, %v4306_v9 }
  0xb9   :  { %2825 = vmatprep.mubr.msk.f32.mxu1 %vm3361_vm0, %v4306_v9 }
  0xba   :  { %2826 = vmatmul.mubr.f32.gmra.mrb[6].mxu1 %v4340_v36 }
  0xbb   :  { %3128 = vmatpush3.bf16.msra.mxu1 %v3934_v1  ;;  %2662 = vmatmul.mubr.f32.gmra.mrb[6].mxu0 %v3685_v34 }
  0xbc   :  { %3129 = vmatprep.subr.bf16.mxu1 %v4303_v40  ;;  %2664 = vmatprep.mubr.msk.f32.mxu0 %vm3361_vm0, %v4306_v9 }
  0xbd   :  { %2828 = vmatprep.mubr.msk.f32.mxu1 %vm3361_vm0, %v4306_v9 }
  0xbe   :  { %2829 = vmatmul.mubr.f32.gmra.mrb[8].mxu1 %v4341_v29 }
  0xbf   :  { %3131 = vmatpush3.bf16.msra.mxu1 %v3940_v31  ;;  %2665 = vmatmul.mubr.f32.gmra.mrb[8].mxu0 %v3713_v11  ;;  %v1783_v31 = vsub.f32 %v1710_v63, %v1710_v63 }
  0xc0   :  { %3132 = vmatprep.subr.bf16.mxu1 %v4303_v40  ;;  %2857 = vmatprep.mubr.msk.f32.mxu1 %vm3361_vm0, %v4306_v9 }
  0xc1   :  { %2936 = vmatprep.mubr.msk.f32.mxu0 %vm3361_vm0, %v4306_v9  ;;  %v1784_v46 = vand.u32 4294901760, %v1783_v31 }
  0xc3   :  { %3134 = vmatpush3.bf16.msra.mxu1 %v3942_v14  ;;  %v1785_v33 = vsub.f32 %v1783_v31, %v1784_v46 }
  0xc4   :  { %2855 = vmatprep.subr.mxu1 %v4306_v9 }
  0xc7   :  { %2856 = vmatpush3.msra.mxu1 %v4342_v10 }
  0xc8   :  { %3135 = vmatprep.subr.bf16.mxu1 %v4303_v40  ;;  %2858 = vmatmul.mubr.f32.vlgmr.msra.gmra.mrb[0].mxu1 %v3740_v0 }
  0xc9   :  { %3137 = vmatpush3.bf16.msra.mxu1 %v3537_v49  ;;  %2860 = vmatprep.mubr.msk.f32.mxu1 %vm3361_vm0, %v4306_v9 }
  0xca   :  { %3138 = vmatprep.subr.bf16.mxu1 %v4303_v40 }
  0xcc   :  { %2861 = vmatmul.mubr.f32.gmra.mrb[2].mxu1 %v3795_v16 }
  0xcd   :  { %3140 = vmatpush3.bf16.msra.mxu1 %v3587_v21  ;;  %2863 = vmatprep.mubr.msk.f32.mxu1 %vm3361_vm0, %v4306_v9 }
  0xce   :  { %3141 = vmatprep.subr.bf16.mxu1 %v4303_v40 }
  0xd0   :  { %2864 = vmatmul.mubr.f32.gmra.mrb[4].mxu1 %v3817_v12 }
  0xd1   :  { %3143 = vmatpush3.bf16.msra.mxu1 %v4331_v22  ;;  %2866 = vmatprep.mubr.msk.f32.mxu1 %vm3361_vm0, %v4306_v9 }
  0xd2   :  { %3144 = vmatprep.subr.bf16.mxu1 %v4303_v40 }
  0xd4   :  { %2867 = vmatmul.mubr.f32.gmra.mrb[6].mxu1 %v3836_v45 }
  0xd5   :  { %3146 = vmatpush3.bf16.msra.mxu1 %v4333_v47  ;;  %2869 = vmatprep.mubr.msk.f32.mxu1 %vm3361_vm0, %v4306_v9 }
  0xd6   :  { %3147 = vmatprep.subr.bf16.mxu1 %v4303_v40 }
  0xd8   :  { %2870 = vmatmul.mubr.f32.gmra.mrb[8].mxu1 %v3864_v51 }
  0xd9   :  { %3149 = vmatpush3.bf16.msra.mxu1 %v4334_v19  ;;  %2898 = vmatprep.mubr.msk.f32.mxu1 %vm3361_vm0, %v4306_v9 }
  0xda   :  { %3150 = vmatprep.subr.bf16.mxu1 %v4303_v40 }
  0xdd   :  { %3152 = vmatpush3.bf16.msra.mxu1 %v4335_v27  ;;  %v1786_v27 = vand.u32 4294901760, %v1785_v33 }
  0xde   :  { %2896 = vmatprep.subr.mxu1 %v4306_v9 }
  0xe1   :  { %2897 = vmatpush3.msra.mxu1 %v4336_v44 }
  0xe2   :  { %2899 = vmatmul.mubr.f32.vlgmr.msra.gmra.mrb[0].mxu1 %v3740_v0  ;;  %3153 = vmatprep.subr.bf16.mxu1 %v4303_v40 }
  0xe3   :  { %2901 = vmatprep.mubr.msk.f32.mxu1 %vm3361_vm0, %v4306_v9 }
  0xe6   :  { %2902 = vmatmul.mubr.f32.gmra.mrb[2].mxu1 %v3795_v16 }
  0xe7   :  { %2904 = vmatprep.mubr.msk.f32.mxu1 %vm3361_vm0, %v4306_v9 }
  0xea   :  { %2905 = vmatmul.mubr.f32.gmra.mrb[4].mxu1 %v3817_v12 }
  0xeb   :  { %2907 = vmatprep.mubr.msk.f32.mxu1 %vm3361_vm0, %v4306_v9 }
  0xee   :  { %2908 = vmatmul.mubr.f32.gmra.mrb[6].mxu1 %v3836_v45 }
  0xef   :  { %2910 = vmatprep.mubr.msk.f32.mxu1 %vm3361_vm0, %v4306_v9 }
  0xf2   :  { %2911 = vmatmul.mubr.f32.gmra.mrb[8].mxu1 %v3864_v51 }
  0xf3   :  { %2923 = vmatprep.mubr.msk.f32.mxu1 %vm3361_vm0, %v4306_v9 }
 0x182   :  { %v876_v49 = vpop.f32.mrb[0].mxu0 }
 0x183   :  { %v2654_v21 = vpop.f32.mrb[1].mxu0 }
 0x186   :  { %v882_v62 = vpop.f32.mrb[2].mxu0 }
 0x187   :  { %v2657_v34 = vpop.f32.mrb[3].mxu0 }
 0x18a   :  { %v888_v11 = vpop.f32.mrb[4].mxu0 }
 0x18b   :  { %v2660_v61 = vpop.f32.mrb[5].mxu0 }
 0x18e   :  { %v894_v37 = vpop.f32.mrb[6].mxu0 }
 0x18f   :  { %v2663_v15 = vpop.f32.mrb[7].mxu0 }
 0x192   :  { %v900_v0 = vpop.f32.mrb[8].mxu0 }
 0x193   :  { %v2666_v54 = vpop.f32.mrb[9].mxu0 }
 0x1b5   :  { %v1675_v17 = vpop.f32.mrb[0].mxu1 }
 0x1b6   :  { %v1703_v16 = vmul.f32 %v1675_v17, %v876_v49  ;;  %v2900_v4 = vpop.f32.mrb[1].mxu1 }
 0x1b8   :  { %v1713_v12 = vand.u32 4294901760, %v1703_v16 }
 0x1b9   :  { %v1681_v45 = vpop.f32.mrb[2].mxu1 }
 0x1ba   :  { %v4203_v8 = vsub.f32 %v1703_v16, %v1713_v12  ;;  %v1704_v51 = vmul.f32 %v1681_v45, %v882_v62  ;;  %v2903_v26 = vpop.f32.mrb[3].mxu1  ;;  %v3365_v62 = vmov 1.0  }
 0x1bc   :  { %v1716_v25 = vand.u32 4294901760, %v1704_v51  ;;  %v1795_v14 = vand.u32 4294901760, %v4203_v8 }
 0x1bd   :  { %v1687_v13 = vpop.f32.mrb[4].mxu1 }
 0x1be   :  { %v4206_v28 = vpack.c.bf16 %v1716_v25, %v1713_v12  ;;  %v1801_v52 = vsub.f32 %v1704_v51, %v1716_v25  ;;  %v1705_v48 = vmul.f32 %v1687_v13, %v888_v11  ;;  %v2906_v57 = vpop.f32.mrb[5].mxu1  ;;  %v1796_v1 = vsub.f32 %v4203_v8, %v1795_v14 }
 0x1c0   :  { %v1802_v23 = vand.u32 4294901760, %v1801_v52  ;;  %v3166_v24 = vpack.c.bf16 %v1801_v52, %v4203_v8  ;;  %v1719_v41 = vand.u32 4294901760, %v1705_v48  ;;  %3155 = vmatpush3.bf16.msra.mxu1 %v4206_v28  ;;  %v1797_v56 = vand.u32 4294901760, %v1796_v1 }
 0x1c1   :  { %v1693_v30 = vpop.f32.mrb[6].mxu1  ;;  %3156 = vmatprep.subr.bf16.mxu1 %v4303_v40 }
 0x1c2   :  { %v1803_v35 = vsub.f32 %v1801_v52, %v1802_v23  ;;  %v1808_v7 = vsub.f32 %v1705_v48, %v1719_v41  ;;  %v1706_v50 = vmul.f32 %v1693_v30, %v894_v37  ;;  %v2909_v3 = vpop.f32.mrb[7].mxu1  ;;  %v3178_v38 = vpack.c.bf16 %v1802_v23, %v1795_v14 }
 0x1c4   :  { %v1804_v39 = vand.u32 4294901760, %v1803_v35  ;;  %v1809_v53 = vand.u32 4294901760, %v1808_v7  ;;  %v1722_v55 = vand.u32 4294901760, %v1706_v50 }
 0x1c5   :  { %v1699_v2 = vpop.f32.mrb[8].mxu1 }
 0x1c6   :  { %v3157_v43 = vpack.c.bf16 %v1722_v55, %v1719_v41  ;;  %v1815_v20 = vsub.f32 %v1706_v50, %v1722_v55  ;;  %v1707_v59 = vmul.f32 %v1699_v2, %v900_v0  ;;  %v2912_v42 = vpop.f32.mrb[9].mxu1  ;;  %v3160_v5 = vpack.c.bf16 %v1804_v39, %v1797_v56 }
 0x1c7   :  { %v1810_v22 = vsub.f32 %v1808_v7, %v1809_v53 }
 0x1c8   :  { %v1816_v32 = vand.u32 4294901760, %v1815_v20  ;;  %v3169_v47 = vpack.c.bf16 %v1815_v20, %v1808_v7  ;;  %v1725_v19 = vand.u32 4294901760, %v1707_v59  ;;  %3158 = vmatpush3.bf16.msra.mxu1 %v3157_v43  ;;  %3161 = vmatpush3.bf16.msra.mxu0 %v3160_v5 }
 0x1c9   :  { %2921 = vmatprep.subr.mxu1 %v4306_v9  ;;  %3162 = vmatprep.subr.bf16.mxu0 %v4303_v40  ;;  %v1811_v6 = vand.u32 4294901760, %v1810_v22 }
 0x1ca   :  { %v1817_v44 = vsub.f32 %v1815_v20, %v1816_v32  ;;  %v1822_v18 = vsub.f32 %v1707_v59, %v1725_v19  ;;  %v3181_v58 = vpack.c.bf16 %v1816_v32, %v1809_v53 }
 0x1cc   :  { %v1818_v36 = vand.u32 4294901760, %v1817_v44  ;;  %v1823_v29 = vand.u32 4294901760, %v1822_v18  ;;  %2922 = vmatpush3.msra.mxu1 %v1725_v19 }
 0x1cd   :  { %2924 = vmatmul.mubr.f32.vlgmr.msra.gmra.mrb[10].mxu1 %v1786_v27 }
 0x1ce   :  { %v1824_v10 = vsub.f32 %v1822_v18, %v1823_v29  ;;  %v3163_v49 = vpack.c.bf16 %v1818_v36, %v1811_v6 }
 0x1d0   :  { %3164 = vmatpush3.bf16.msra.mxu0 %v3163_v49  ;;  %v1825_v21 = vand.u32 4294901760, %v1824_v10 }
 0x1d1   :  { %2934 = vmatprep.subr.mxu0 %v4306_v9 }
 0x1d4   :  { %2935 = vmatpush3.msra.mxu0 %v1825_v21 }
 0x1d5   :  { %3165 = vmatprep.subr.bf16.mxu0 %v4303_v40  ;;  %2937 = vmatmul.mubr.msk.f32.vlgmr.msra.gmra.mrb[10].mxu0 %vm1708_vm5, %v3365_v62 }
 0x1d6   :  { %3167 = vmatpush3.bf16.msra.mxu0 %v3166_v24  ;;  %2949 = vmatprep.mubr.msk.f32.mxu0 %vm3361_vm0, %v4306_v9 }
 0x1d7   :  { %3168 = vmatprep.subr.bf16.mxu0 %v4303_v40 }
 0x1da   :  { %3170 = vmatpush3.bf16.msra.mxu0 %v3169_v47 }
 0x1db   :  { %2947 = vmatprep.subr.mxu0 %v4306_v9 }
 0x1de   :  { %2948 = vmatpush3.msra.mxu0 %v1822_v18 }
 0x1df   :  { %3171 = vmatprep.subr.bf16.mxu0 %v4303_v40  ;;  %2950 = vmatmul.mubr.f32.vlgmr.msra.gmra.mrb[10].mxu0 %v1783_v31 }
 0x1e0   :  { %3173 = vmatpush3.bf16.msra.mxu0 %v4206_v28  ;;  %2962 = vmatprep.mubr.msk.f32.mxu0 %vm3361_vm0, %v4306_v9 }
 0x1e1   :  { %3174 = vmatprep.subr.bf16.mxu0 %v4303_v40 }
 0x1e4   :  { %3176 = vmatpush3.bf16.msra.mxu0 %v3157_v43 }
 0x1e5   :  { %2960 = vmatprep.subr.mxu0 %v4306_v9 }
 0x1e8   :  { %2961 = vmatpush3.msra.mxu0 %v1725_v19 }
 0x1e9   :  { %3177 = vmatprep.subr.bf16.mxu0 %v4303_v40  ;;  %2963 = vmatmul.mubr.f32.vlgmr.msra.gmra.mrb[10].mxu0 %v1784_v46 }
 0x1ea   :  { %3179 = vmatpush3.bf16.msra.mxu0 %v3178_v38  ;;  %2975 = vmatprep.mubr.msk.f32.mxu0 %vm3361_vm0, %v4306_v9 }
 0x1eb   :  { %3180 = vmatprep.subr.bf16.mxu0 %v4303_v40 }
 0x1ee   :  { %3182 = vmatpush3.bf16.msra.mxu0 %v3181_v58 }
 0x1ef   :  { %2973 = vmatprep.subr.mxu0 %v4306_v9 }
 0x1f2   :  { %2974 = vmatpush3.msra.mxu0 %v1823_v29 }
 0x1f3   :  { %3183 = vmatprep.subr.bf16.mxu0 %v4303_v40  ;;  %2976 = vmatmul.mubr.msk.f32.vlgmr.msra.gmra.mrb[10].mxu0 %vm1708_vm5, %v3365_v62 }
 0x1f4   :  { %3185 = vmatpush3.bf16.msra.mxu0 %v4206_v28  ;;  %2988 = vmatprep.mubr.msk.f32.mxu0 %vm3361_vm0, %v4306_v9 }
 0x1f5   :  { %3186 = vmatprep.subr.bf16.mxu0 %v4303_v40 }
 0x1f8   :  { %3188 = vmatpush3.bf16.msra.mxu0 %v3157_v43 }
 0x1f9   :  { %2986 = vmatprep.subr.mxu0 %v4306_v9 }
 0x1fc   :  { %2987 = vmatpush3.msra.mxu0 %v1725_v19 }
 0x1fd   :  { %2989 = vmatmul.mubr.msk.f32.vlgmr.msra.gmra.mrb[10].mxu0 %vm1708_vm5, %v3365_v62 }
 0x2a0   :  { %v1788_v34 = vpop.f32.mrb[10].mxu1 }
 0x2a1   :  { %v2925_v11 = vpop.f32.mrb[11].mxu1 }
 0x2d0   :  { %v2206_v61 = vpop.f32.mrb[10].mxu0 }
 0x2d1   :  { %v3189_v37 = vadd.f32 %v2206_v61, %v1788_v34  ;;  %v2990_v15 = vpop.f32.mrb[11].mxu0 }
 0x2d3   :  { %2210 = vst [vmem:[%s4247_s3] sm:$0x1] %v3189_v37 }
 0x2d4   :  { %2215 = vsyncpa [#allocation3], 1 }
 0x2d5   :  { %2216 = vsyncpa [#allocation5], 1 }

</bundles_post_ra>
